<compile_context>
chip_gen: v5e
topology: v5e:2x2
jax: 0.10.0
libtpu: 0.0.40
codegen_flags: <defaults>
</compile_context>

<pallas_src>
import numpy as np
import jax
import jax.numpy as jnp
from jax.experimental import pallas as pl
from jax.experimental.pallas import tpu as pltpu


def ste_kernel(t_ref, tf_ref, bs_ref, w_ref, bias_ref, out_ref):
    # t_ref:    (TB, 1)   time values for this block
    # tf_ref:   (1, p)    2*pi*domaint_F   (precomputed)
    # bs_ref:   (1, p)    bias_sin
    # w_ref:    (p, NB)   fused weight  W1^T[i, j] * sw[n]  at lane n*et + j
    # bias_ref: (1, NB)   fused bias    b1[j]*sw[n] + sb[n]
    # out_ref:  (TB, NB)  flattened STE block; out[t, n*et+j] = STE[t, n, j]
    code = jnp.sin(t_ref[...] * tf_ref[...] + bs_ref[...])            # (TB, p)
    acc = jnp.dot(code, w_ref[...], preferred_element_type=jnp.float32)
    out_ref[...] = (acc + bias_ref[...]).astype(out_ref.dtype)


def _round_up(x, m):
    return ((x + m - 1) // m) * m


def st_embedding(time_index, domaint_F, params, out_dtype=jnp.float32):
    """time_index: (T,) f32, domaint_F: (p,) f32. Returns (T, num_node, et_dim)."""
    w1, b1, w2, b2, bias_sin, node_emb = params
    T = time_index.shape[0]
    p = domaint_F.shape[0]
    et_dim = w1.shape[0]
    num_node = node_emb.shape[0]
    NE = num_node * et_dim
    f32 = jnp.float32

    # ---- one-time wrapper-side precomputation (plain JAX, tiny) ----
    sw = (node_emb.astype(f32) @ w2.astype(f32))[:, 0]            # (N,)   SE @ W2
    sb = node_emb.astype(f32) @ b2.astype(f32)                    # (N,)   SE @ b2
    sw_rep = jnp.repeat(sw, et_dim)                                # (NE,)  sw[n] at n*et+j
    sb_rep = jnp.repeat(sb, et_dim)                                # (NE,)
    w1t_tiled = jnp.tile(w1.T.astype(f32), (1, num_node))          # (p, NE) W1^T replicated
    w_fused = w1t_tiled * sw_rep[None, :]                          # (p, NE) folded weight
    b1_tiled = jnp.tile(b1.astype(f32), num_node)                  # (NE,)  b1[j] at n*et+j
    bias_fused = (b1_tiled * sw_rep + sb_rep).reshape(1, NE)       # (1, NE) folded bias
    tf = (2.0 * jnp.pi * domaint_F.astype(f32)).reshape(1, p)      # (1, p)
    bs2 = bias_sin.astype(f32).reshape(1, p)                       # (1, p)

    # ---- time blocking (>= 2 grid steps when T >= 16, for v7x megacore) ----
    if T >= 16:
        TB = min(512, _round_up(pl.cdiv(T, 2), 8))
    else:
        TB = _round_up(max(T, 1), 8)
    grid_t = pl.cdiv(T, TB)
    T_pad = grid_t * TB
    t2 = time_index.astype(f32).reshape(T, 1)
    if T_pad != T:
        # Pad only the tiny time INPUT; the output stays exactly (T, NE), so
        # there is no post-kernel slice copy (Pallas masks the ragged block).
        t2 = jnp.pad(t2, ((0, T_pad - T), (0, 0)))

    # ---- lane (NE) tiling: only matters at production num_node sizes ----
    NB = NE
    if NE > 4096:
        for cand in range(4096, 127, -128):
            if NE % cand == 0:
                NB = cand
                break
    grid_n = NE // NB

    grid_spec = pltpu.PrefetchScalarGridSpec(
        num_scalar_prefetch=0,
        grid=(grid_t, grid_n),
        in_specs=[
            pl.BlockSpec((TB, 1), lambda t, n: (t, 0)),    # time block
            pl.BlockSpec((1, p), lambda t, n: (0, 0)),     # 2*pi*F      (constant)
            pl.BlockSpec((1, p), lambda t, n: (0, 0)),     # bias_sin    (constant)
            pl.BlockSpec((p, NB), lambda t, n: (0, n)),    # fused weight
            pl.BlockSpec((1, NB), lambda t, n: (0, n)),    # fused bias
        ],
        out_specs=pl.BlockSpec((TB, NB), lambda t, n: (t, n)),
    )

    out_flat = pl.pallas_call(
        ste_kernel,
        out_shape=jax.ShapeDtypeStruct((T, NE), out_dtype),
        grid_spec=grid_spec,
        compiler_params=pltpu.CompilerParams(
            dimension_semantics=("parallel", "parallel")),
    )(t2, tf, bs2, w_fused, bias_fused)

    return out_flat.reshape(T, num_node, et_dim)   # free contiguous reshape


def ste_reference(time_index, domaint_F, params):
    """Pure-JAX faithful reference of the PyTorch forward."""
    w1, b1, w2, b2, bias_sin, node_emb = params
    code = jnp.sin(2.0 * jnp.pi * domaint_F[None, :] * time_index[:, None]
                   + bias_sin[None, :])                             # (T, p)
    m1 = code @ w1.T + b1                                           # (T, et)
    te_pre = m1[..., None] * w2[None, None, :, 0] + b2              # (T, et, es)
    te = jnp.transpose(te_pre, (0, 2, 1))                           # (T, es, et)
    ste = jnp.einsum('nk,tkj->tnj', node_emb, te)                   # (T, N, et)
    return ste


if __name__ == "__main__":
    # Small shapes consistent with the module's forward.
    p, et_dim, es_dim, num_node, T = 4, 32, 32, 16, 8

    key = jax.random.PRNGKey(0)
    ks = jax.random.split(key, 8)
    # Deterministic synthetic parameters (module __init__ shapes).
    w1 = jax.random.normal(ks[0], (et_dim, p), jnp.float32) * 0.1        # mapping.weight
    b1 = jax.random.normal(ks[1], (et_dim,), jnp.float32) * 0.1          # mapping.bias
    w2 = jax.random.normal(ks[2], (es_dim, 1), jnp.float32) * 0.1        # mapping2.weight
    b2 = jax.random.normal(ks[3], (es_dim,), jnp.float32) * 0.1          # mapping2.bias
    bias_sin = jax.random.normal(ks[4], (p,), jnp.float32)               # bias_sin
    node_emb = jax.random.normal(ks[5], (num_node, es_dim), jnp.float32)  # node_embeddings
    params = (w1, b1, w2, b2, bias_sin, node_emb)

    time_index = jnp.arange(T, dtype=jnp.float32)                        # (T,)
    domaint_F = jax.random.uniform(ks[6], (p,), jnp.float32, 0.1, 1.0)   # (p,)

    out = st_embedding(time_index, domaint_F, params)
    out = jax.block_until_ready(out)
    ref = ste_reference(time_index, domaint_F, params)
    assert out.shape == (T, num_node, et_dim), out.shape
    np.testing.assert_allclose(np.asarray(out), np.asarray(ref), rtol=1e-5, atol=1e-5)

    # Second silent check: non-multiple-of-TB T exercises time blocking, the
    # 2-step "parallel" grid (both v7x TCs get work), the padded time input,
    # and the masked ragged final output block (no post-kernel slice copy).
    T2 = 300
    time_index2 = jnp.linspace(0.0, 10.0, T2, dtype=jnp.float32)
    out2 = jax.block_until_ready(st_embedding(time_index2, domaint_F, params))
    ref2 = ste_reference(time_index2, domaint_F, params)
    np.testing.assert_allclose(np.asarray(out2), np.asarray(ref2), rtol=1e-5, atol=1e-5)

    print("KERNEL_OK")
</pallas_src>

<mosaic_0001>
module attributes {stable_mosaic.version = 11 : i64} {
  func.func @ste_kernel(%arg0: i32, %arg1: i32, %arg2: memref<8x1xf32, #tpu.memory_space<vmem>>, %arg3: memref<1x4xf32, #tpu.memory_space<vmem>>, %arg4: memref<1x4xf32, #tpu.memory_space<vmem>>, %arg5: memref<4x512xf32, #tpu.memory_space<vmem>>, %arg6: memref<1x512xf32, #tpu.memory_space<vmem>>, %arg7: memref<8x512xf32, #tpu.memory_space<vmem>>) attributes {dimension_semantics = [#tpu.dimension_semantics<parallel>, #tpu.dimension_semantics<parallel>], iteration_bounds = array<i64: 1, 1>, scalar_prefetch = 0 : i64, scratch_operands = 0 : i64, tpu.core_type = #tpu.core_type<tc>, window_params = [{transform_indices = @transform_0, window_bounds = array<i64: 8, 1>}, {pipeline_mode = #tpu.pipeline_mode<synchronous>, transform_indices = @transform_1, window_bounds = array<i64: 1, 4>}, {pipeline_mode = #tpu.pipeline_mode<synchronous>, transform_indices = @transform_2, window_bounds = array<i64: 1, 4>}, {transform_indices = @transform_3, window_bounds = array<i64: 4, 512>}, {transform_indices = @transform_4, window_bounds = array<i64: 1, 512>}, {transform_indices = @transform_5, window_bounds = array<i64: 8, 512>}]} {
    %c0 = arith.constant 0 : index
    %c0_0 = arith.constant 0 : index
    %0 = vector.load %arg2[%c0, %c0_0] : memref<8x1xf32, #tpu.memory_space<vmem>>, vector<8x1xf32>
    %c0_1 = arith.constant 0 : index
    %c0_2 = arith.constant 0 : index
    %1 = vector.load %arg3[%c0_1, %c0_2] : memref<1x4xf32, #tpu.memory_space<vmem>>, vector<1x4xf32>
    %2 = vector.broadcast %0 : vector<8x1xf32> to vector<8x4xf32>
    %3 = vector.broadcast %1 : vector<1x4xf32> to vector<8x4xf32>
    %4 = arith.mulf %2, %3 : vector<8x4xf32>
    %c0_3 = arith.constant 0 : index
    %c0_4 = arith.constant 0 : index
    %5 = vector.load %arg4[%c0_3, %c0_4] : memref<1x4xf32, #tpu.memory_space<vmem>>, vector<1x4xf32>
    %6 = vector.broadcast %5 : vector<1x4xf32> to vector<8x4xf32>
    %7 = arith.addf %4, %6 : vector<8x4xf32>
    %8 = math.sin %7 : vector<8x4xf32>
    %c0_5 = arith.constant 0 : index
    %c0_6 = arith.constant 0 : index
    %9 = vector.load %arg5[%c0_5, %c0_6] : memref<4x512xf32, #tpu.memory_space<vmem>>, vector<4x512xf32>
    %cst = arith.constant dense<0.000000e+00> : vector<8x512xf32>
    %10 = tpu.matmul %8, %9, %cst {dimension_numbers = #tpu.dot_dimension_numbers<[1], [0], [0], [1], [0, 0, 1, 1], [], []>} : vector<8x4xf32>, vector<4x512xf32>, vector<8x512xf32> -> vector<8x512xf32>
    %c0_7 = arith.constant 0 : index
    %c0_8 = arith.constant 0 : index
    %11 = vector.load %arg6[%c0_7, %c0_8] : memref<1x512xf32, #tpu.memory_space<vmem>>, vector<1x512xf32>
    %12 = vector.broadcast %11 : vector<1x512xf32> to vector<8x512xf32>
    %13 = arith.addf %10, %12 : vector<8x512xf32>
    %c0_9 = arith.constant 0 : index
    %c0_10 = arith.constant 0 : index
    %14 = vector.load %arg7[%c0_9, %c0_10] : memref<8x512xf32, #tpu.memory_space<vmem>>, vector<8x512xf32>
    tpu.vector_store %arg7[%c0_9, %c0_10], %13 {strides = array<i32>} : memref<8x512xf32, #tpu.memory_space<vmem>>, vector<8x512xf32>,
    return
  }
  func.func @transform_0(%arg0: i32, %arg1: i32) -> (i32, i32) {
    %c0_i32 = arith.constant 0 : i32
    %c0_i32_0 = arith.constant 0 : i32
    return %arg0, %c0_i32 : i32, i32
  }
  func.func @transform_1(%arg0: i32, %arg1: i32) -> (i32, i32) {
    %c0_i32 = arith.constant 0 : i32
    %c0_i32_0 = arith.constant 0 : i32
    %c0_i32_1 = arith.constant 0 : i32
    return %c0_i32, %c0_i32_0 : i32, i32
  }
  func.func @transform_2(%arg0: i32, %arg1: i32) -> (i32, i32) {
    %c0_i32 = arith.constant 0 : i32
    %c0_i32_0 = arith.constant 0 : i32
    %c0_i32_1 = arith.constant 0 : i32
    return %c0_i32, %c0_i32_0 : i32, i32
  }
  func.func @transform_3(%arg0: i32, %arg1: i32) -> (i32, i32) {
    %c0_i32 = arith.constant 0 : i32
    %c0_i32_0 = arith.constant 0 : i32
    return %c0_i32, %arg1 : i32, i32
  }
  func.func @transform_4(%arg0: i32, %arg1: i32) -> (i32, i32) {
    %c0_i32 = arith.constant 0 : i32
    %c0_i32_0 = arith.constant 0 : i32
    return %c0_i32, %arg1 : i32, i32
  }
  func.func @transform_5(%arg0: i32, %arg1: i32) -> (i32, i32) {
    %c0_i32 = arith.constant 0 : i32
    return %arg0, %arg1 : i32, i32
  }
}

</mosaic_0001>

<bundles_post_ra>
// kernel: tpu_custom_call.1
= control target key start
LH: loop header
LB: loop body
LE: loop exit
PB: predicated region body
PF: predicated region fallthrough
CT: control target
= control target key end

     0   :  { %10 = vsyncpa [#allocation3], 0  ;;  %s532_s0 = inlined_call_operand.vmem [shape: f32[8,1], index: 0, kind: input, shape index: {}]   ;;  %s533_s1 = inlined_call_operand.vmem [shape: f32[1,4], index: 1, kind: input, shape index: {}]   ;;  %s534_s2 = inlined_call_operand.vmem [shape: f32[1,4], index: 2, kind: input, shape index: {}]   ;;  %s535_s3 = inlined_call_operand.hbm [shape: f32[4,512], index: 3, kind: input, shape index: {}]   ;;  %s536_s4 = inlined_call_operand.vmem [shape: f32[1,512], index: 4, kind: input, shape index: {}]   ;;  %s537_s5 = inlined_call_operand.hbm [shape: f32[8,512], index: 5, kind: output, shape index: {}]  }
   0x1   :  { %11 = vsyncpa [#allocation4], 0  ;;  %s23_s20 = sshll.u32 %s535_s3, 4  ;;  %s416_s21 = smov [#allocation2]   ;;  %s24_s20 = int_to_ptr.hbm [resolvable:$true] %s23_s20 }
   0x2   :  { %s25_s22 = sshll.u32 %s416_s21, 4  ;;  %s26_s22 = int_to_ptr.vmem [resolvable:$true] %s25_s22 }
   0x3   :  { %28 = dma.hbm_to_vmem [thread:$0]  %s24_s20, 256, %s26_s22, [#allocation3]  }
   0x4   :  { %412 = dma.done.wait [#allocation3], 256  }
   0x5   :  { %413 = vsyncadd [#allocation3], 4294967040  ;;  %v417_v0 = vmov 0   ;;  %v35_v1 = vld [vmem:[%s532_s0] sm:$0xff]  ;;  %v206_v2 = vld [vmem:[#allocation2] sm:$0xff]  ;;  %vm231_vm0 = vcmask 1043456  }
   0x6   :  { %361 = vset.pattern.permute.xlu0 %v417_v0  ;;  %v207_v3 = vld [vmem:[#allocation2 + $0x8] sm:$0xff]  ;;  %220 = vst [vmem:[#allocation1] ss:$2 sm:$0xff] %v206_v2  ;;  %v362_v4 = vld [vmem:[%s533_s1] ss:$0 sm:$0xff]  ;;  %s331_s6 = sshll.u32 %s537_s5, 4  ;;  %s332_s6 = int_to_ptr.hbm [resolvable:$true] %s331_s6 }
   0x7   :  { %39 = vperm.xlu0 %361, %v35_v1   ;;  %222 = vst [vmem:[#allocation1 + $0x10] ss:$2 sm:$0xff] %v207_v3  ;;  %v363_v5 = vld [vmem:[%s534_s2] ss:$0 sm:$0xff]  ;;  %v418_v24 = vmov 2102212464  }
   0x8   :  { %v419_v26 = vmov 920167782   ;;  %v420_v29 = vmov 1326507024   ;;  %v421_v31 = vmov 683565275  }
   0x9   :  { %v422_v33 = vmov 2475754826   ;;  %v423_v36 = vmov 2131351028   ;;  %s424_s2 = smov [#allocation5]  }
   0xa   :  { %s329_s28 = sshll.u32 %s424_s2, 4  ;;  %s330_s28 = int_to_ptr.vmem [resolvable:$true] %s329_s28 }
   0xd   :  { %v223_v6 = vld.sshfl [vmem:[#allocation1] sm:$0xff pattern:$0x75316420]  ;;  %v224_v7 = vld.sshfl [vmem:[#allocation1 + $0x8] sm:$0xff pattern:$0x75316420] }
   0xe   :  { %344 = vmatpush.msk.msra.mxu0 %vm231_vm0, %v223_v6  ;;  %346 = vmatpush.msk.msra.mxu1 %vm231_vm0, %v224_v7  ;;  %v225_v9 = vld.sshfl [vmem:[#allocation1 + $0x10] sm:$0xff pattern:$0x75316420]  ;;  %v226_v10 = vld.sshfl [vmem:[#allocation1 + $0x18] sm:$0xff pattern:$0x75316420] }
   0xf   :  { %348 = vmatpush.msk.msra.mxu2 %vm231_vm0, %v225_v9  ;;  %350 = vmatpush.msk.msra.mxu3 %vm231_vm0, %v226_v10 }
  0x79   :  { %v40_v8 = vpop.permute.xlu0 %39 }
  0x7a   :  { %v45_v11 = vmul.f32 %v362_v4, %v40_v8 }
  0x7c   :  { %v468_v12 = vadd.f32 %v363_v5, %v45_v11 }
  0x7e   :  { %v54_v13 = vand.u32 2139095040, %v468_v12  ;;  %v51_v16 = vand.u32 2147483647, %v468_v12  ;;  %vm53_vm13 = vcmp.lt.s32.totalorder %v468_v12, 0 }
  0x80   :  { %v55_v14 = vshrl.u32 %v54_v13, 23  ;;  %v58_v18 = vand.u32 8388607, %v51_v16  ;;  %vm52_vm14 = vcmp.le.f32.partialorder %v51_v16, 0.7853982 }
  0x82   :  { %v341_v15 = vadd.s32 4294967169, %v55_v14  ;;  %v59_v22 = vor.u32 8388608, %v58_v18 }
  0x84   :  { %v61_v17 = vadd.s32 1, %v341_v15  ;;  %v483_v43 = vshll.u32 %v59_v22, 8 }
  0x86   :  { %vm62_vm1 = vcmp.gt.s32.totalorder %v61_v17, 0  ;;  %v100_v53 = vand.u32 65535, %v483_v43  ;;  %v101_v55 = vshrl.u32 %v483_v43, 16 }
  0x87   :  { %v63_v19 = vsel %vm62_vm1, %v61_v17, 0 }
  0x88   :  { %v65_v20 = vand.u32 31, %v63_v19  ;;  %v476_v23 = vshrl.u32 %v63_v19, 5 }
  0x8a   :  { %v474_v21 = vsub.s32 32, %v65_v20  ;;  %v77_v25 = vshll.u32 %v418_v24, %v65_v20  ;;  %v80_v27 = vshll.u32 %v419_v26, %v65_v20  ;;  %v68_v32 = vshll.u32 %v421_v31, %v65_v20 }
  0x8b   :  { %v71_v35 = vshll.u32 %v422_v33, %v65_v20  ;;  %v74_v38 = vshll.u32 %v423_v36, %v65_v20  ;;  %vm86_vm2 = vcmp.lt.s32.totalorder %v476_v23, 4  ;;  %vm83_vm3 = vcmp.lt.s32.totalorder %v476_v23, 1 }
  0x8c   :  { %v78_v28 = vshrl.u32 %v419_v26, %v474_v21  ;;  %v81_v30 = vshrl.u32 %v420_v29, %v474_v21  ;;  %v69_v34 = vshrl.u32 %v422_v33, %v474_v21  ;;  %v72_v37 = vshrl.u32 %v423_v36, %v474_v21 }
  0x8d   :  { %v75_v39 = vshrl.u32 %v418_v24, %v474_v21  ;;  %vm85_vm4 = vcmp.lt.s32.totalorder %v476_v23, 3  ;;  %vm84_vm5 = vcmp.lt.s32.totalorder %v476_v23, 2  ;;  %v67_v17 = vshrl.u32 %v421_v31, %v474_v21 }
  0x8e   :  { %v79_v40 = vor.u32 %v78_v28, %v77_v25  ;;  %v82_v41 = vor.u32 %v81_v30, %v80_v27  ;;  %v70_v42 = vor.u32 %v69_v34, %v68_v32  ;;  %v73_v44 = vor.u32 %v72_v37, %v71_v35 }
  0x8f   :  { %v76_v45 = vor.u32 %v75_v39, %v74_v38 }
  0x90   :  { %v92_v46 = vsel %vm86_vm2, %v79_v40, 920167782  ;;  %v96_v47 = vsel %vm86_vm2, %v82_v41, 1326507024  ;;  %v91_v48 = vsel %vm83_vm3, %v70_v42, %v73_v44  ;;  %v87_v25 = vsel %vm83_vm3, %v67_v17, %v70_v42 }
  0x91   :  { %v93_v49 = vsel %vm85_vm4, %v76_v45, %v92_v46  ;;  %v95_v50 = vsel %vm83_vm3, %v73_v44, %v76_v45  ;;  %v97_v52 = vsel %vm85_vm4, %v79_v40, %v96_v47  ;;  %v88_v13 = vsel %vm86_vm2, %v76_v45, 2102212464 }
  0x92   :  { %v94_v51 = vsel %vm84_vm5, %v91_v48, %v93_v49  ;;  %v98_v54 = vsel %vm84_vm5, %v95_v50, %v97_v52  ;;  %v89_v26 = vsel %vm85_vm4, %v73_v44, %v88_v13  ;;  %vm227_vm2 = vcmask 31744  }
  0x93   :  { %v124_v56 = vand.u32 65535, %v94_v51  ;;  %v125_v57 = vshrl.u32 %v94_v51, 16  ;;  %v102_v58 = vand.u32 65535, %v98_v54  ;;  %v103_v59 = vshrl.u32 %v98_v54, 16 }
  0x94   :  { %v90_v31 = vsel %vm84_vm5, %v87_v25, %v89_v26  ;;  %vm194_vm3 = vweird.f32 %v468_v12 }
  0x95   :  { %v127_v60 = vmul.u32 %v125_v57, %v100_v53  ;;  %v128_v61 = vmul.u32 %v124_v56, %v101_v55  ;;  %v105_v62 = vmul.u32 %v103_v59, %v100_v53  ;;  %v106_v63 = vmul.u32 %v102_v58, %v101_v55 }
  0x96   :  { %v126_v1 = vmul.u32 %v124_v56, %v100_v53  ;;  %v104_v3 = vmul.u32 %v102_v58, %v100_v53  ;;  %v129_v5 = vmul.u32 %v125_v57, %v101_v55  ;;  %v107_v6 = vmul.u32 %v103_v59, %v101_v55 }
  0x97   :  { %v130_v2 = vshll.u32 %v127_v60, 16  ;;  %v108_v4 = vshll.u32 %v105_v62, 16  ;;  %v132_v7 = vshll.u32 %v128_v61, 16  ;;  %v110_v9 = vshll.u32 %v106_v63, 16 }
  0x98   :  { %v131_v22 = vshrl.u32 %v127_v60, 16  ;;  %v109_v27 = vshrl.u32 %v105_v62, 16  ;;  %v133_v29 = vshrl.u32 %v128_v61, 16  ;;  %v111_v32 = vshrl.u32 %v106_v63, 16 }
  0x99   :  { %vm134_vm6 = vc.u32 %v126_v1, %v130_v2  ;;  %v136_v8 = vadd.s32 %v130_v2, %v126_v1  ;;  %vm112_vm7 = vc.u32 %v104_v3, %v108_v4  ;;  %v114_v10 = vadd.s32 %v108_v4, %v104_v3 }
  0x9a   :  { %v135_v11 = vsel %vm134_vm6, 1, %v417_v0  ;;  %v113_v14 = vsel %vm112_vm7, 1, %v417_v0  ;;  %v144_v36 = vmul.u32 %v483_v43, %v90_v31 }
  0x9b   :  { %v137_v15 = vadd.s32 %v135_v11, %v129_v5  ;;  %vm138_vm8 = vc.u32 %v136_v8, %v132_v7  ;;  %v115_v18 = vadd.s32 %v113_v14, %v107_v6  ;;  %vm116_vm9 = vc.u32 %v114_v10, %v110_v9 }
  0x9c   :  { %v139_v19 = vsel %vm138_vm8, 1, %v417_v0  ;;  %v117_v20 = vsel %vm116_vm9, 1, %v417_v0  ;;  %v140_v0 = vadd.s32 %v136_v8, %v132_v7 }
  0x9d   :  { %v141_v24 = vadd.s32 %v139_v19, %v137_v15  ;;  %v119_v28 = vadd.s32 %v117_v20, %v115_v18 }
  0x9f   :  { %v142_v30 = vadd.s32 %v141_v24, %v131_v22  ;;  %v120_v21 = vadd.s32 %v119_v28, %v109_v27  ;;  %v208_v27 = vld [vmem:[%s536_s4] sm:$0xf] }
  0xa0   :  { %v210_v28 = vperm.slane %v208_v27, 0 }
  0xa1   :  { %v143_v33 = vadd.s32 %v142_v30, %v133_v29  ;;  %v121_v34 = vadd.s32 %v120_v21, %v111_v32  ;;  %v211_v29 = vperm.slane %v208_v27, 1 }
  0xa3   :  { %v147_v35 = vadd.s32 1, %v143_v33  ;;  %vm146_vm10 = vc.u32 %v121_v34, %v140_v0  ;;  %v145_v48 = vadd.s32 %v140_v0, %v121_v34 }
  0xa5   :  { %v148_v37 = vsel %vm146_vm10, %v147_v35, %v143_v33  ;;  %v212_v33 = vperm.slane %v208_v27, 2 }
  0xa6   :  { %v149_v38 = vadd.s32 %v148_v37, %v144_v36 }
  0xa8   :  { %v150_v39 = vadd.s32 536870912, %v149_v38 }
  0xaa   :  { %v151_v40 = vshrl.u32 %v150_v39, 30 }
  0xac   :  { %v152_v41 = vshll.u32 %v151_v40, 30  ;;  %v175_v61 = vsub.s32 4, %v151_v40 }
  0xae   :  { %v153_v42 = vsub.s32 %v149_v38, %v152_v41  ;;  %v176_v3 = vsel %vm53_vm13, %v175_v61, %v151_v40 }
  0xaf   :  { %v178_v6 = vsel %vm52_vm14, 0, %v176_v3 }
  0xb0   :  { %vm154_vm11 = vcmp.lt.s32.totalorder %v153_v42, 0  ;;  %v155_v44 = vsub.s32 0, %v153_v42  ;;  %v195_v11 = vadd.s32 3, %v178_v6 }
  0xb2   :  { %v156_v45 = vsel %vm154_vm11, %v155_v44, %v153_v42  ;;  %v196_v17 = vand.u32 3, %v195_v11 }
  0xb3   :  { %v157_v46 = vclz %v156_v45 }
  0xb4   :  { %vm198_vm15 = vcmp.eq.s32.totalorder %v196_v17, 0  ;;  %vm201_vm0 = vcmp.eq.s32.totalorder %v196_v17, 2  ;;  %vm197_vm1 = vcmp.lt.s32.totalorder %v196_v17, 2 }
  0xb5   :  { %v342_v47 = vadd.s32 4294967294, %v157_v46 }
  0xb7   :  { %vm343_vm12 = vcmp.lt.s32.totalorder %v342_v47, 0 }
  0xb8   :  { %v160_v23 = vsel %vm343_vm12, 0, %v342_v47 }
  0xb9   :  { %v161_v49 = vsub.s32 32, %v160_v23  ;;  %v165_v50 = vsub.s32 4294967266, %v160_v23  ;;  %v162_v51 = vshll.u32 %v153_v42, %v160_v23 }
  0xbb   :  { %v163_v52 = vshrl.u32 %v145_v48, %v161_v49  ;;  %v166_v43 = vadd.s32 127, %v165_v50 }
  0xbd   :  { %v164_v53 = vor.u32 %v163_v52, %v162_v51  ;;  %v167_v54 = vshll.u32 %v166_v43, 23 }
  0xbf   :  { %v168_v55 = vor.u32 4788187, %v167_v54  ;;  %v171_v57 = vcvt.s32.f32 %v164_v53 }
  0xc1   :  { %v169_v56 = vand.u32 2147483647, %v168_v55 }
  0xc3   :  { %v172_v58 = vmul.f32 %v171_v57, %v169_v56 }
  0xc5   :  { %v173_v59 = vxor.u32 2147483648, %v172_v58 }
  0xc7   :  { %v174_v60 = vsel %vm53_vm13, %v173_v59, %v172_v58 }
  0xc8   :  { %v177_v62 = vsel %vm52_vm14, %v468_v12, %v174_v60  ;;  %v213_v12 = vperm.slane %v208_v27, 3 }
  0xc9   :  { %v179_v63 = vmul.f32 %v177_v62, %v177_v62 }
  0xcb   :  { %v180_v1 = vmul.f32 -0.001358992, %v179_v63  ;;  %v187_v2 = vmul.f32 -0.00019511016, %v179_v63 }
  0xcd   :  { %v181_v4 = vadd.f32 0.041655596, %v180_v1  ;;  %v188_v5 = vadd.f32 0.008332121, %v187_v2 }
  0xcf   :  { %v182_v7 = vmul.f32 %v181_v4, %v179_v63  ;;  %v189_v8 = vmul.f32 %v188_v5, %v179_v63 }
  0xd1   :  { %v183_v9 = vadd.f32 -0.4999988, %v182_v7  ;;  %v190_v10 = vadd.f32 -0.16666654, %v189_v8 }
  0xd3   :  { %v184_v13 = vmul.f32 %v183_v9, %v179_v63  ;;  %v191_v14 = vmul.f32 %v190_v10, %v179_v63 }
  0xd5   :  { %v185_v15 = vadd.f32 1.0, %v184_v13  ;;  %v192_v16 = vadd.f32 1.0, %v191_v14 }
  0xd7   :  { %v193_v18 = vmul.f32 %v192_v16, %v177_v62  ;;  %v202_v19 = vxor.u32 2147483648, %v185_v15 }
  0xd9   :  { %v199_v20 = vxor.u32 2147483648, %v193_v18  ;;  %v203_v24 = vsel %vm201_vm0, %v202_v19, %v193_v18 }
  0xdb   :  { %v200_v22 = vsel %vm198_vm15, %v185_v15, %v199_v20 }
  0xdc   :  { %v204_v25 = vsel %vm197_vm1, %v200_v22, %v203_v24 }
  0xdd   :  { %v205_v26 = vsel %vm194_vm3, nan, %v204_v25 }
  0xde   :  { %345 = vmatmul.msk.f32.vlgmr.msra.gmra.mxu0 %vm227_vm2, %v205_v26  ;;  %347 = vmatmul.msk.f32.vlgmr.msra.gmra.mxu1 %vm227_vm2, %v205_v26 }
  0xdf   :  { %349 = vmatmul.msk.f32.vlgmr.msra.gmra.mxu2 %vm227_vm2, %v205_v26  ;;  %351 = vmatmul.msk.f32.vlgmr.msra.gmra.mxu3 %vm227_vm2, %v205_v26 }
 0x15b   :  { %v257_v30 = vpop.f32.mrf.mxu0  ;;  %v277_v32 = vpop.f32.mrf.mxu1 }
 0x15c   :  { %v258_v21 = vadd.f32 %v257_v30, %v210_v28  ;;  %v278_v31 = vadd.f32 %v277_v32, %v211_v29 }
 0x15e   :  { %320 = vst [vmem:[#allocation5] sm:$0xff] %v258_v21 }
 0x15f   :  { %321 = vst [vmem:[#allocation5 + $0x8] sm:$0xff] %v278_v31 }
 0x162   :  { %v297_v34 = vpop.f32.mrf.mxu2  ;;  %v317_v0 = vpop.f32.mrf.mxu3 }
 0x163   :  { %v298_v35 = vadd.f32 %v297_v34, %v212_v33  ;;  %v318_v36 = vadd.f32 %v317_v0, %v213_v12 }
 0x165   :  { %322 = vst [vmem:[#allocation5 + $0x10] sm:$0xff] %v298_v35 }
 0x166   :  { %323 = vst [vmem:[#allocation5 + $0x18] sm:$0xff] %v318_v36 }
 0x167   :  { %334 = dma.vmem_to_hbm [thread:$0]  %s330_s28, 512, %s332_s6, [#allocation4]  }
 0x168   :  { %414 = dma.done.wait [#allocation4], 512  }
 0x169   :  { %415 = vsyncadd [#allocation4], 4294966784 }
 0x16a   :  { %339 = vsyncpa [#allocation3], 1 }
 0x16b   :  { %340 = vsyncpa [#allocation4], 1 }

</bundles_post_ra>
